<compile_context>
chip_gen: v6e
topology: v6e:2x2x1
jax: 0.10.0
libtpu: 0.0.40
codegen_flags: <defaults>
</compile_context>

<pallas_src>
import numpy as np
import jax
import jax.numpy as jnp
from jax.experimental import pallas as pl
from jax.experimental.pallas import tpu as pltpu


def _round_up(x, m):
    return ((x + m - 1) // m) * m


# ----------------------------------------------------------------------------
# Fused kernel: in-kernel embedding gather + MLP (BN folded) + output + sigmoid.
# Everything is computed in (features, batch) orientation for lane-dense tiles.
# ----------------------------------------------------------------------------
def dnn_kernel(idxT_ref, tableT_ref, *rest):
    out_ref = rest[-1]
    layer_refs = rest[:-1]                       # [W1,b1, W2,b2, ..., w_out,b_out]
    n_hidden = (len(layer_refs) - 2) // 2

    num_fields, tile_b = idxT_ref.shape
    _, vocab_p = tableT_ref.shape

    tableT = tableT_ref[...]                                     # (ed, vocab_p)
    row_ids = jax.lax.broadcasted_iota(jnp.int32, (vocab_p, tile_b), 0)

    # Embedding gather as one-hot matmul: for each field f,
    #   emb_f[:, b] = table[idx[b, f], :]   ->  tableT @ onehot_f   (ed, tile_b)
    pieces = []
    for f in range(num_fields):
        idx_f = idxT_ref[pl.ds(f, 1), :]                         # (1, tile_b)
        onehot = (row_ids == idx_f).astype(jnp.float32)          # (vocab_p, tile_b)
        pieces.append(jnp.dot(tableT, onehot,
                              preferred_element_type=jnp.float32))
    h = jnp.concatenate(pieces, axis=0)                          # (F*ed, tile_b)

    # Hidden layers: Linear(+folded eval-BN) -> ReLU  (Dropout(eval) = identity)
    i = 0
    for _ in range(n_hidden):
        w_ref, b_ref = layer_refs[i], layer_refs[i + 1]
        i += 2
        h = jnp.dot(w_ref[...], h, preferred_element_type=jnp.float32) + b_ref[...]
        h = jnp.maximum(h, 0.0)

    # Output Linear(H_last -> 1): lane-dense (1, H) @ (H, tile_b) MXU call.
    w_out_ref, b_out_ref = layer_refs[i], layer_refs[i + 1]
    logit = jnp.dot(w_out_ref[...], h,
                    preferred_element_type=jnp.float32) + b_out_ref[...]

    # sigmoid: exp runs on the EUP; divide only touches the tiny (1, tile_b) row.
    out_ref[...] = 1.0 / (1.0 + jnp.exp(-logit))


# ----------------------------------------------------------------------------
# Parameter init (matches torch DNNModel __init__ shapes, eval-mode BN folded).
# ----------------------------------------------------------------------------
def init_params(key, field_dims, embed_dim, mlp_dims):
    total = int(sum(field_dims))
    F = len(field_dims)
    d_in = F * embed_dim
    eps = 1e-5
    keys = iter(jax.random.split(key, 4 + 2 * len(mlp_dims)))

    # FeaturesEmbedding: xavier_uniform_ table (total, embed_dim)
    lim = float(np.sqrt(6.0 / (total + embed_dim)))
    table = jax.random.uniform(next(keys), (total, embed_dim), jnp.float32, -lim, lim)

    # Hidden layers with eval-BatchNorm folded in:
    #   scale = gamma / sqrt(var + eps), shift = beta - mean * scale
    #   W' = scale[:, None] * W ;  b' = scale * b + shift
    layers = []
    dims = [d_in] + list(mlp_dims)
    for i in range(len(mlp_dims)):
        fan_in, fan_out = dims[i], dims[i + 1]
        bound = float(1.0 / np.sqrt(fan_in))
        W = jax.random.uniform(next(keys), (fan_out, fan_in), jnp.float32,
                               -bound, bound)                    # PyTorch (out, in)
        b = jax.random.uniform(next(keys), (fan_out,), jnp.float32, -bound, bound)
        gamma = jnp.ones((fan_out,), jnp.float32)
        beta = jnp.zeros((fan_out,), jnp.float32)
        running_mean = jnp.zeros((fan_out,), jnp.float32)
        running_var = jnp.ones((fan_out,), jnp.float32)
        scale = gamma / jnp.sqrt(running_var + eps)
        shift = beta - running_mean * scale
        Wf = W * scale[:, None]
        bf = (b * scale + shift)[:, None]                        # (fan_out, 1)
        layers.append((Wf, bf))

    # Output Linear(mlp_dims[-1], 1)
    bound = float(1.0 / np.sqrt(mlp_dims[-1]))
    w_out = jax.random.uniform(next(keys), (1, mlp_dims[-1]), jnp.float32,
                               -bound, bound)
    b_out = jax.random.uniform(next(keys), (1, 1), jnp.float32, -bound, bound)

    offsets = jnp.asarray(np.array((0, *np.cumsum(field_dims)[:-1]), dtype=np.int32))

    # Transposed, lane-padded table for the in-kernel one-hot gather.
    vocab_p = _round_up(total, 128)
    tableT = jnp.zeros((embed_dim, vocab_p), jnp.float32).at[:, :total].set(table.T)

    return {
        "offsets": offsets,
        "num_embeddings": total,
        "tableT": tableT,              # (embed_dim, vocab_p), zero-padded
        "layers": layers,              # [(W_folded (out,in), b_folded (out,1)), ...]
        "w_out": w_out,                # (1, H_last)
        "b_out": b_out,                # (1, 1)
    }


# ----------------------------------------------------------------------------
# Forward pass: one fused pallas_call, gridded over the batch.
# ----------------------------------------------------------------------------
def dnn_forward(params, x):
    """x: int32 (batch, num_fields) of per-field category indices -> (batch,) f32."""
    B, F = x.shape
    idxT = (x + params["offsets"][None, :]).astype(jnp.int32).T     # (F, B)

    tile_b = 512 if B >= 512 else _round_up(B, 128)
    Bp = _round_up(B, tile_b)
    if Bp != B:
        idxT = jnp.pad(idxT, ((0, 0), (0, Bp - B)))                 # pad with idx 0

    flat_weights = []
    in_specs = [
        pl.BlockSpec((F, tile_b), lambda b: (0, b)),                # indices, tiled
        pl.BlockSpec(params["tableT"].shape, lambda b: (0, 0)),     # table, resident
    ]
    for (W, bcol) in params["layers"]:
        flat_weights += [W, bcol]
        in_specs += [pl.BlockSpec(W.shape, lambda b: (0, 0)),
                     pl.BlockSpec(bcol.shape, lambda b: (0, 0))]
    flat_weights += [params["w_out"], params["b_out"]]
    in_specs += [pl.BlockSpec(params["w_out"].shape, lambda b: (0, 0)),
                 pl.BlockSpec(params["b_out"].shape, lambda b: (0, 0))]

    out = pl.pallas_call(
        dnn_kernel,
        out_shape=jax.ShapeDtypeStruct((1, Bp), jnp.float32),
        grid=(Bp // tile_b,),
        in_specs=in_specs,
        out_specs=pl.BlockSpec((1, tile_b), lambda b: (0, b)),
        compiler_params=pltpu.CompilerParams(
            dimension_semantics=("parallel",)),
    )(idxT, params["tableT"], *flat_weights)

    return out[0, :B]                                               # (B,)


# ----------------------------------------------------------------------------
# Pure-JAX reference (same eval-mode math) for a correctness check.
# ----------------------------------------------------------------------------
def dnn_reference(params, x):
    B, F = x.shape
    total = params["num_embeddings"]
    table = params["tableT"][:, :total].T                           # (total, ed)
    idx = (x + params["offsets"][None, :]).astype(jnp.int32)
    h = table[idx].reshape(B, -1)                                   # (B, F*ed)
    for (W, bcol) in params["layers"]:
        h = jnp.maximum(h @ W.T + bcol[:, 0][None, :], 0.0)
    logit = h @ params["w_out"].T + params["b_out"][0]
    return jax.nn.sigmoid(logit)[:, 0]


if __name__ == "__main__":
    field_dims = [10, 20, 30, 40]      # num_fields = 4, sum = 100
    embed_dim = 16
    mlp_dims = (32, 16)
    dropout = 0.2                      # inactive in eval mode
    batch = 8

    key = jax.random.PRNGKey(0)
    kp, kx = jax.random.split(key)
    params = init_params(kp, field_dims, embed_dim, mlp_dims)

    # deterministic input: one index per field, within that field's cardinality
    fkeys = jax.random.split(kx, len(field_dims))
    x = jnp.stack(
        [jax.random.randint(fk, (batch,), 0, fd) for fk, fd in zip(fkeys, field_dims)],
        axis=1).astype(jnp.int32)                                   # (batch, num_fields)

    fwd = jax.jit(dnn_forward)
    y = fwd(params, x)
    jax.block_until_ready(y)

    assert y.shape == (batch,) and y.dtype == jnp.float32
    assert bool(jnp.all((y >= 0.0) & (y <= 1.0)))

    y_ref = dnn_reference(params, x)
    assert bool(jnp.allclose(y, y_ref, rtol=1e-3, atol=1e-3)), (y, y_ref)

    print("KERNEL_OK")
</pallas_src>

<mosaic_0001>
module attributes {stable_mosaic.version = 11 : i64} {
  func.func @dnn_kernel(%arg0: i32, %arg1: memref<4x128xi32, #tpu.memory_space<vmem>>, %arg2: memref<16x128xf32, #tpu.memory_space<vmem>>, %arg3: memref<32x64xf32, #tpu.memory_space<vmem>>, %arg4: memref<32x1xf32, #tpu.memory_space<vmem>>, %arg5: memref<16x32xf32, #tpu.memory_space<vmem>>, %arg6: memref<16x1xf32, #tpu.memory_space<vmem>>, %arg7: memref<1x16xf32, #tpu.memory_space<vmem>>, %arg8: memref<1x1xf32, #tpu.memory_space<vmem>>, %arg9: memref<1x128xf32, #tpu.memory_space<vmem>>) attributes {dimension_semantics = [#tpu.dimension_semantics<parallel>], iteration_bounds = array<i64: 1>, scalar_prefetch = 0 : i64, scratch_operands = 0 : i64, tpu.core_type = #tpu.core_type<tc>, window_params = [{transform_indices = @transform_0, window_bounds = array<i64: 4, 128>}, {pipeline_mode = #tpu.pipeline_mode<synchronous>, transform_indices = @transform_1, window_bounds = array<i64: 16, 128>}, {pipeline_mode = #tpu.pipeline_mode<synchronous>, transform_indices = @transform_2, window_bounds = array<i64: 32, 64>}, {pipeline_mode = #tpu.pipeline_mode<synchronous>, transform_indices = @transform_3, window_bounds = array<i64: 32, 1>}, {pipeline_mode = #tpu.pipeline_mode<synchronous>, transform_indices = @transform_4, window_bounds = array<i64: 16, 32>}, {pipeline_mode = #tpu.pipeline_mode<synchronous>, transform_indices = @transform_5, window_bounds = array<i64: 16, 1>}, {pipeline_mode = #tpu.pipeline_mode<synchronous>, transform_indices = @transform_6, window_bounds = array<i64: 1, 16>}, {pipeline_mode = #tpu.pipeline_mode<synchronous>, transform_indices = @transform_7, window_bounds = array<i64: 1, 1>}, {transform_indices = @transform_8, window_bounds = array<i64: 1, 128>}]} {
    %c0 = arith.constant 0 : index
    %c0_0 = arith.constant 0 : index
    %0 = vector.load %arg2[%c0, %c0_0] : memref<16x128xf32, #tpu.memory_space<vmem>>, vector<16x128xf32>
    %1 = tpu.iota {dimensions = array<i32: 0>} : vector<128x128xi32>
    %c0_1 = arith.constant 0 : index
    %c0_2 = arith.constant 0 : index
    %2 = vector.load %arg1[%c0_1, %c0_2] : memref<4x128xi32, #tpu.memory_space<vmem>>, vector<1x128xi32>
    %3 = vector.broadcast %2 : vector<1x128xi32> to vector<128x128xi32>
    %4 = arith.cmpi eq, %1, %3 : vector<128x128xi32>
    %5 = arith.extui %4 : vector<128x128xi1> to vector<128x128xi32>
    %6 = arith.sitofp %5 : vector<128x128xi32> to vector<128x128xf32>
    %cst = arith.constant dense<0.000000e+00> : vector<16x128xf32>
    %7 = tpu.matmul %0, %6, %cst {dimension_numbers = #tpu.dot_dimension_numbers<[1], [0], [0], [1], [0, 0, 1, 1], [], []>} : vector<16x128xf32>, vector<128x128xf32>, vector<16x128xf32> -> vector<16x128xf32>
    %c1 = arith.constant 1 : index
    %c0_3 = arith.constant 0 : index
    %8 = vector.load %arg1[%c1, %c0_3] : memref<4x128xi32, #tpu.memory_space<vmem>>, vector<1x128xi32>
    %9 = vector.broadcast %8 : vector<1x128xi32> to vector<128x128xi32>
    %10 = arith.cmpi eq, %1, %9 : vector<128x128xi32>
    %11 = arith.extui %10 : vector<128x128xi1> to vector<128x128xi32>
    %12 = arith.sitofp %11 : vector<128x128xi32> to vector<128x128xf32>
    %cst_4 = arith.constant dense<0.000000e+00> : vector<16x128xf32>
    %13 = tpu.matmul %0, %12, %cst_4 {dimension_numbers = #tpu.dot_dimension_numbers<[1], [0], [0], [1], [0, 0, 1, 1], [], []>} : vector<16x128xf32>, vector<128x128xf32>, vector<16x128xf32> -> vector<16x128xf32>
    %c2 = arith.constant 2 : index
    %c0_5 = arith.constant 0 : index
    %14 = vector.load %arg1[%c2, %c0_5] : memref<4x128xi32, #tpu.memory_space<vmem>>, vector<1x128xi32>
    %15 = vector.broadcast %14 : vector<1x128xi32> to vector<128x128xi32>
    %16 = arith.cmpi eq, %1, %15 : vector<128x128xi32>
    %17 = arith.extui %16 : vector<128x128xi1> to vector<128x128xi32>
    %18 = arith.sitofp %17 : vector<128x128xi32> to vector<128x128xf32>
    %cst_6 = arith.constant dense<0.000000e+00> : vector<16x128xf32>
    %19 = tpu.matmul %0, %18, %cst_6 {dimension_numbers = #tpu.dot_dimension_numbers<[1], [0], [0], [1], [0, 0, 1, 1], [], []>} : vector<16x128xf32>, vector<128x128xf32>, vector<16x128xf32> -> vector<16x128xf32>
    %c3 = arith.constant 3 : index
    %c0_7 = arith.constant 0 : index
    %20 = vector.load %arg1[%c3, %c0_7] : memref<4x128xi32, #tpu.memory_space<vmem>>, vector<1x128xi32>
    %21 = vector.broadcast %20 : vector<1x128xi32> to vector<128x128xi32>
    %22 = arith.cmpi eq, %1, %21 : vector<128x128xi32>
    %23 = arith.extui %22 : vector<128x128xi1> to vector<128x128xi32>
    %24 = arith.sitofp %23 : vector<128x128xi32> to vector<128x128xf32>
    %cst_8 = arith.constant dense<0.000000e+00> : vector<16x128xf32>
    %25 = tpu.matmul %0, %24, %cst_8 {dimension_numbers = #tpu.dot_dimension_numbers<[1], [0], [0], [1], [0, 0, 1, 1], [], []>} : vector<16x128xf32>, vector<128x128xf32>, vector<16x128xf32> -> vector<16x128xf32>
    %26 = tpu.concatenate %7, %13, %19, %25 in 0 : vector<16x128xf32>, vector<16x128xf32>, vector<16x128xf32>, vector<16x128xf32> -> vector<64x128xf32>
    %c0_9 = arith.constant 0 : index
    %c0_10 = arith.constant 0 : index
    %27 = vector.load %arg3[%c0_9, %c0_10] : memref<32x64xf32, #tpu.memory_space<vmem>>, vector<32x64xf32>
    %cst_11 = arith.constant dense<0.000000e+00> : vector<32x128xf32>
    %28 = tpu.matmul %27, %26, %cst_11 {dimension_numbers = #tpu.dot_dimension_numbers<[1], [0], [0], [1], [0, 0, 1, 1], [], []>} : vector<32x64xf32>, vector<64x128xf32>, vector<32x128xf32> -> vector<32x128xf32>
    %c0_12 = arith.constant 0 : index
    %c0_13 = arith.constant 0 : index
    %29 = vector.load %arg4[%c0_12, %c0_13] : memref<32x1xf32, #tpu.memory_space<vmem>>, vector<32x1xf32>
    %30 = vector.broadcast %29 : vector<32x1xf32> to vector<32x128xf32>
    %31 = arith.addf %28, %30 : vector<32x128xf32>
    %cst_14 = arith.constant 0.000000e+00 : f32
    %32 = vector.broadcast %cst_14 : f32 to vector<32x128xf32>
    %33 = arith.maximumf %31, %32 : vector<32x128xf32>
    %c0_15 = arith.constant 0 : index
    %c0_16 = arith.constant 0 : index
    %34 = vector.load %arg5[%c0_15, %c0_16] : memref<16x32xf32, #tpu.memory_space<vmem>>, vector<16x32xf32>
    %cst_17 = arith.constant dense<0.000000e+00> : vector<16x128xf32>
    %35 = tpu.matmul %34, %33, %cst_17 {dimension_numbers = #tpu.dot_dimension_numbers<[1], [0], [0], [1], [0, 0, 1, 1], [], []>} : vector<16x32xf32>, vector<32x128xf32>, vector<16x128xf32> -> vector<16x128xf32>
    %c0_18 = arith.constant 0 : index
    %c0_19 = arith.constant 0 : index
    %36 = vector.load %arg6[%c0_18, %c0_19] : memref<16x1xf32, #tpu.memory_space<vmem>>, vector<16x1xf32>
    %37 = vector.broadcast %36 : vector<16x1xf32> to vector<16x128xf32>
    %38 = arith.addf %35, %37 : vector<16x128xf32>
    %cst_20 = arith.constant 0.000000e+00 : f32
    %39 = vector.broadcast %cst_20 : f32 to vector<16x128xf32>
    %40 = arith.maximumf %38, %39 : vector<16x128xf32>
    %c0_21 = arith.constant 0 : index
    %c0_22 = arith.constant 0 : index
    %41 = vector.load %arg7[%c0_21, %c0_22] : memref<1x16xf32, #tpu.memory_space<vmem>>, vector<1x16xf32>
    %cst_23 = arith.constant dense<0.000000e+00> : vector<1x128xf32>
    %42 = tpu.matmul %41, %40, %cst_23 {dimension_numbers = #tpu.dot_dimension_numbers<[1], [0], [0], [1], [0, 0, 1, 1], [], []>} : vector<1x16xf32>, vector<16x128xf32>, vector<1x128xf32> -> vector<1x128xf32>
    %c0_24 = arith.constant 0 : index
    %c0_25 = arith.constant 0 : index
    %43 = vector.load %arg8[%c0_24, %c0_25] : memref<1x1xf32, #tpu.memory_space<vmem>>, vector<1x1xf32>
    %44 = vector.broadcast %43 : vector<1x1xf32> to vector<1x128xf32>
    %45 = arith.addf %42, %44 : vector<1x128xf32>
    %cst_26 = arith.constant 0.000000e+00 : f32
    %46 = vector.broadcast %cst_26 : f32 to vector<1x128xf32>
    %47 = arith.subf %46, %45 : vector<1x128xf32>
    %48 = math.exp %47 : vector<1x128xf32>
    %cst_27 = arith.constant 1.000000e+00 : f32
    %49 = vector.broadcast %cst_27 : f32 to vector<1x128xf32>
    %50 = arith.addf %49, %48 : vector<1x128xf32>
    %cst_28 = arith.constant 1.000000e+00 : f32
    %51 = vector.broadcast %cst_28 : f32 to vector<1x128xf32>
    %52 = arith.divf %51, %50 : vector<1x128xf32>
    %c0_29 = arith.constant 0 : index
    %c0_30 = arith.constant 0 : index
    %53 = vector.load %arg9[%c0_29, %c0_30] : memref<1x128xf32, #tpu.memory_space<vmem>>, vector<1x128xf32>
    tpu.vector_store %arg9[%c0_29, %c0_30], %52 {strides = array<i32>} : memref<1x128xf32, #tpu.memory_space<vmem>>, vector<1x128xf32>,
    return
  }
  func.func @transform_0(%arg0: i32) -> (i32, i32) {
    %c0_i32 = arith.constant 0 : i32
    %c0_i32_0 = arith.constant 0 : i32
    return %c0_i32, %arg0 : i32, i32
  }
  func.func @transform_1(%arg0: i32) -> (i32, i32) {
    %c0_i32 = arith.constant 0 : i32
    %c0_i32_0 = arith.constant 0 : i32
    %c0_i32_1 = arith.constant 0 : i32
    return %c0_i32, %c0_i32_0 : i32, i32
  }
  func.func @transform_2(%arg0: i32) -> (i32, i32) {
    %c0_i32 = arith.constant 0 : i32
    %c0_i32_0 = arith.constant 0 : i32
    %c0_i32_1 = arith.constant 0 : i32
    return %c0_i32, %c0_i32_0 : i32, i32
  }
  func.func @transform_3(%arg0: i32) -> (i32, i32) {
    %c0_i32 = arith.constant 0 : i32
    %c0_i32_0 = arith.constant 0 : i32
    %c0_i32_1 = arith.constant 0 : i32
    return %c0_i32, %c0_i32_0 : i32, i32
  }
  func.func @transform_4(%arg0: i32) -> (i32, i32) {
    %c0_i32 = arith.constant 0 : i32
    %c0_i32_0 = arith.constant 0 : i32
    %c0_i32_1 = arith.constant 0 : i32
    return %c0_i32, %c0_i32_0 : i32, i32
  }
  func.func @transform_5(%arg0: i32) -> (i32, i32) {
    %c0_i32 = arith.constant 0 : i32
    %c0_i32_0 = arith.constant 0 : i32
    %c0_i32_1 = arith.constant 0 : i32
    return %c0_i32, %c0_i32_0 : i32, i32
  }
  func.func @transform_6(%arg0: i32) -> (i32, i32) {
    %c0_i32 = arith.constant 0 : i32
    %c0_i32_0 = arith.constant 0 : i32
    %c0_i32_1 = arith.constant 0 : i32
    return %c0_i32, %c0_i32_0 : i32, i32
  }
  func.func @transform_7(%arg0: i32) -> (i32, i32) {
    %c0_i32 = arith.constant 0 : i32
    %c0_i32_0 = arith.constant 0 : i32
    %c0_i32_1 = arith.constant 0 : i32
    return %c0_i32, %c0_i32_0 : i32, i32
  }
  func.func @transform_8(%arg0: i32) -> (i32, i32) {
    %c0_i32 = arith.constant 0 : i32
    %c0_i32_0 = arith.constant 0 : i32
    return %c0_i32, %arg0 : i32, i32
  }
}

</mosaic_0001>

<bundles_post_ra>
// kernel: dnn_forward.1
= control target key start
LH: loop header
LB: loop body
LE: loop exit
PB: predicated region body
PF: predicated region fallthrough
CT: control target
= control target key end

     0   :  { %v33_v0 = vlaneseq  ;;  %v1308_v9 = vmov 1.0   ;;  %v1309_v25 = vmov 0   ;;  %v1310_v63 = vmov 0.0   ;;  %s1750_s0 = inlined_call_operand.vmem [shape: s32[4,128], index: 0, kind: input, shape index: {}]   ;;  %s1751_s1 = inlined_call_operand.vmem [shape: f32[16,128], index: 1, kind: input, shape index: {}]   ;;  %s1752_s2 = inlined_call_operand.vmem [shape: f32[32,64], index: 2, kind: input, shape index: {}]   ;;  %s1753_s3 = inlined_call_operand.vmem [shape: f32[32,1], index: 3, kind: input, shape index: {}]   ;;  %s1754_s7 = inlined_call_operand.<no memory space> [shape: f32[1,1], index: 7, kind: input, shape index: {}]   ;;  %s1755_s5 = inlined_call_operand.vmem [shape: f32[16,1], index: 5, kind: input, shape index: {}]   ;;  %s1756_s4 = inlined_call_operand.vmem [shape: f32[16,32], index: 4, kind: input, shape index: {}]   ;;  %s1757_s6 = inlined_call_operand.vmem [shape: f32[1,16], index: 6, kind: input, shape index: {}]   ;;  %s1758_s8 = inlined_call_operand.vmem [shape: f32[1,128], index: 8, kind: output, shape index: {}]  }
   0x1   :  { %v1360_v1 = vld [vmem:[%s1751_s1] sm:$0xff]  ;;  %v1558_v23 = vld [vmem:[%s1751_s1 + $0x8] sm:$0xff]  ;;  %1302 = vset.pattern.permute.xlu0 %v1309_v25  ;;  %v569_v26 = vld [vmem:[%s1753_s3 + $0x18] sm:$0xff]  ;;  %1303 = vset.pattern.permute.xlu1 %v1309_v25  ;;  %v13_v27 = vstv %s1754_s7 }
   0x2   :  { %v1362_v2 = vshrl.u32 %v33_v0, 7  ;;  %1185 = vmatprep.mubr.f32.mxu1 %v1360_v1  ;;  %1150 = vmatprep.mubr.f32.mxu0 %v1360_v1  ;;  %v1369_v3 = vld [vmem:[%s1750_s0 + $0x1] ss:$0 sm:$0xff]  ;;  %v1374_v4 = vld [vmem:[%s1750_s0] ss:$0 sm:$0xff]  ;;  %v567_v28 = vld [vmem:[%s1753_s3 + $0x8] sm:$0xff] }
   0x3   :  { %v1538_v21 = vld [vmem:[%s1750_s0 + $0x3] ss:$0 sm:$0xff]  ;;  %v1549_v22 = vld [vmem:[%s1750_s0 + $0x2] ss:$0 sm:$0xff]  ;;  %587 = vperm.xlu0 %1302, %v569_v26   ;;  %14 = vst [vmem:[#allocation2] sm:$0x1] %v13_v27  ;;  %577 = vperm.xlu1 %1303, %v567_v28  }
   0x4   :  { %v1377_v5 = vadd.s32 120, %v1362_v2  ;;  %v1380_v6 = vadd.s32 112, %v1362_v2  ;;  %v1383_v7 = vadd.s32 104, %v1362_v2  ;;  %v1386_v8 = vadd.s32 96, %v1362_v2  ;;  %v562_v24 = vld [vmem:[%s1752_s2] sm:$0xff]  ;;  %v568_v29 = vld [vmem:[%s1753_s3 + $0x10] sm:$0xff] }
   0x5   :  { %v1405_v10 = vadd.s32 88, %v1362_v2  ;;  %v1416_v11 = vadd.s32 80, %v1362_v2  ;;  %v1427_v12 = vadd.s32 72, %v1362_v2  ;;  %v1438_v13 = vadd.s32 64, %v1362_v2  ;;  %v566_v30 = vld [vmem:[%s1753_s3] sm:$0xff]  ;;  %v695_v31 = vld [vmem:[%s1755_s5 + $0x8] sm:$0xff] }
   0x6   :  { %vm198_vm0 = vcmp.eq.s32.totalorder %v1377_v5, %v1369_v3  ;;  %vm70_vm1 = vcmp.eq.s32.totalorder %v1377_v5, %v1374_v4  ;;  %vm197_vm2 = vcmp.eq.s32.totalorder %v1380_v6, %v1369_v3  ;;  %vm69_vm3 = vcmp.eq.s32.totalorder %v1380_v6, %v1374_v4  ;;  %v694_v32 = vld [vmem:[%s1755_s5] sm:$0xff]  ;;  %v563_v42 = vld [vmem:[%s1752_s2 + $0x8] sm:$0xff]  ;;  %v564_v43 = vld [vmem:[%s1752_s2 + $0x10] sm:$0xff] }
   0x7   :  { %1153 = vmatprep.subr.msk.mxu1 %vm198_vm0, %v1308_v9  ;;  %1118 = vmatprep.subr.msk.mxu0 %vm70_vm1, %v1308_v9  ;;  %vm196_vm4 = vcmp.eq.s32.totalorder %v1383_v7, %v1369_v3  ;;  %vm68_vm5 = vcmp.eq.s32.totalorder %v1383_v7, %v1374_v4  ;;  %vm195_vm6 = vcmp.eq.s32.totalorder %v1386_v8, %v1369_v3  ;;  %v1449_v14 = vadd.s32 56, %v1362_v2  ;;  %v565_v44 = vld [vmem:[%s1752_s2 + $0x18] sm:$0xff]  ;;  %v692_v45 = vld [vmem:[%s1756_s4] sm:$0xff]  ;;  %v693_v62 = vld [vmem:[%s1756_s4 + $0x8] sm:$0xff] }
   0x8   :  { %1154 = vmatpush3.msk.msra.mxu1 %vm198_vm0, %v1308_v9  ;;  %1119 = vmatpush3.msk.msra.mxu0 %vm70_vm1, %v1308_v9  ;;  %vm67_vm7 = vcmp.eq.s32.totalorder %v1386_v8, %v1374_v4  ;;  %vm194_vm8 = vcmp.eq.s32.totalorder %v1405_v10, %v1369_v3  ;;  %vm66_vm9 = vcmp.eq.s32.totalorder %v1405_v10, %v1374_v4  ;;  %v1460_v15 = vadd.s32 48, %v1362_v2 }
   0x9   :  { %1155 = vmatprep.subr.msk.mxu1 %vm197_vm2, %v1308_v9  ;;  %1120 = vmatprep.subr.msk.mxu0 %vm69_vm3, %v1308_v9  ;;  %vm193_vm10 = vcmp.eq.s32.totalorder %v1416_v11, %v1369_v3  ;;  %vm65_vm11 = vcmp.eq.s32.totalorder %v1416_v11, %v1374_v4  ;;  %vm192_vm12 = vcmp.eq.s32.totalorder %v1427_v12, %v1369_v3  ;;  %v1471_v16 = vadd.s32 40, %v1362_v2 }
   0xa   :  { %1156 = vmatpush3.msk.msra.mxu1 %vm197_vm2, %v1308_v9  ;;  %1121 = vmatpush3.msk.msra.mxu0 %vm69_vm3, %v1308_v9  ;;  %vm64_vm13 = vcmp.eq.s32.totalorder %v1427_v12, %v1374_v4  ;;  %vm191_vm14 = vcmp.eq.s32.totalorder %v1438_v13, %v1369_v3  ;;  %vm63_vm15 = vcmp.eq.s32.totalorder %v1438_v13, %v1374_v4  ;;  %v1482_v17 = vadd.s32 32, %v1362_v2  ;;  %v791_v33 = vld [vmem:[#allocation2] sm:$0x1] }
   0xb   :  { %1157 = vmatprep.subr.msk.mxu1 %vm196_vm4, %v1308_v9  ;;  %1122 = vmatprep.subr.msk.mxu0 %vm68_vm5, %v1308_v9  ;;  %vm190_vm0 = vcmp.eq.s32.totalorder %v1449_v14, %v1369_v3  ;;  %vm62_vm1 = vcmp.eq.s32.totalorder %v1449_v14, %v1374_v4  ;;  %vm189_vm2 = vcmp.eq.s32.totalorder %v1460_v15, %v1369_v3  ;;  %v1493_v18 = vadd.s32 24, %v1362_v2 }
   0xc   :  { %1158 = vmatpush3.msk.msra.mxu1 %vm196_vm4, %v1308_v9  ;;  %1123 = vmatpush3.msk.msra.mxu0 %vm68_vm5, %v1308_v9  ;;  %vm61_vm3 = vcmp.eq.s32.totalorder %v1460_v15, %v1374_v4  ;;  %vm188_vm4 = vcmp.eq.s32.totalorder %v1471_v16, %v1369_v3  ;;  %vm60_vm5 = vcmp.eq.s32.totalorder %v1471_v16, %v1374_v4  ;;  %v1504_v19 = vadd.s32 16, %v1362_v2 }
   0xd   :  { %1159 = vmatprep.subr.msk.mxu1 %vm195_vm6, %v1308_v9  ;;  %1124 = vmatprep.subr.msk.mxu0 %vm67_vm7, %v1308_v9  ;;  %v1515_v20 = vadd.s32 8, %v1362_v2 }
   0xe   :  { %1160 = vmatpush3.msk.msra.mxu1 %vm195_vm6, %v1308_v9  ;;  %1125 = vmatpush3.msk.msra.mxu0 %vm67_vm7, %v1308_v9  ;;  %vm187_vm6 = vcmp.eq.s32.totalorder %v1482_v17, %v1369_v3  ;;  %vm59_vm7 = vcmp.eq.s32.totalorder %v1482_v17, %v1374_v4 }
   0xf   :  { %1161 = vmatprep.subr.msk.mxu1 %vm194_vm8, %v1308_v9  ;;  %1126 = vmatprep.subr.msk.mxu0 %vm66_vm9, %v1308_v9 }
  0x10   :  { %1162 = vmatpush3.msk.msra.mxu1 %vm194_vm8, %v1308_v9  ;;  %1127 = vmatpush3.msk.msra.mxu0 %vm66_vm9, %v1308_v9  ;;  %vm186_vm8 = vcmp.eq.s32.totalorder %v1493_v18, %v1369_v3  ;;  %vm58_vm9 = vcmp.eq.s32.totalorder %v1493_v18, %v1374_v4 }
  0x11   :  { %1163 = vmatprep.subr.msk.mxu1 %vm193_vm10, %v1308_v9  ;;  %1128 = vmatprep.subr.msk.mxu0 %vm65_vm11, %v1308_v9 }
  0x12   :  { %1164 = vmatpush3.msk.msra.mxu1 %vm193_vm10, %v1308_v9  ;;  %1129 = vmatpush3.msk.msra.mxu0 %vm65_vm11, %v1308_v9  ;;  %vm185_vm10 = vcmp.eq.s32.totalorder %v1504_v19, %v1369_v3  ;;  %vm57_vm11 = vcmp.eq.s32.totalorder %v1504_v19, %v1374_v4 }
  0x13   :  { %1165 = vmatprep.subr.msk.mxu1 %vm192_vm12, %v1308_v9  ;;  %1130 = vmatprep.subr.msk.mxu0 %vm64_vm13, %v1308_v9 }
  0x14   :  { %1166 = vmatpush3.msk.msra.mxu1 %vm192_vm12, %v1308_v9  ;;  %1131 = vmatpush3.msk.msra.mxu0 %vm64_vm13, %v1308_v9  ;;  %vm184_vm12 = vcmp.eq.s32.totalorder %v1515_v20, %v1369_v3  ;;  %vm56_vm13 = vcmp.eq.s32.totalorder %v1515_v20, %v1374_v4 }
  0x15   :  { %1167 = vmatprep.subr.msk.mxu1 %vm191_vm14, %v1308_v9  ;;  %1132 = vmatprep.subr.msk.mxu0 %vm63_vm15, %v1308_v9 }
  0x16   :  { %1168 = vmatpush3.msk.msra.mxu1 %vm191_vm14, %v1308_v9  ;;  %1133 = vmatpush3.msk.msra.mxu0 %vm63_vm15, %v1308_v9  ;;  %vm183_vm14 = vcmp.eq.s32.totalorder %v1362_v2, %v1369_v3  ;;  %vm55_vm15 = vcmp.eq.s32.totalorder %v1362_v2, %v1374_v4 }
  0x17   :  { %1169 = vmatprep.subr.msk.mxu1 %vm190_vm0, %v1308_v9  ;;  %1134 = vmatprep.subr.msk.mxu0 %vm62_vm1, %v1308_v9 }
  0x18   :  { %1170 = vmatpush3.msk.msra.mxu1 %vm190_vm0, %v1308_v9  ;;  %1135 = vmatpush3.msk.msra.mxu0 %vm62_vm1, %v1308_v9  ;;  %vm454_vm0 = vcmp.eq.s32.totalorder %v1377_v5, %v1538_v21  ;;  %vm326_vm1 = vcmp.eq.s32.totalorder %v1377_v5, %v1549_v22 }
  0x19   :  { %1171 = vmatprep.subr.msk.mxu1 %vm189_vm2, %v1308_v9  ;;  %1136 = vmatprep.subr.msk.mxu0 %vm61_vm3, %v1308_v9 }
  0x1a   :  { %1172 = vmatpush3.msk.msra.mxu1 %vm189_vm2, %v1308_v9  ;;  %1137 = vmatpush3.msk.msra.mxu0 %vm61_vm3, %v1308_v9  ;;  %vm453_vm2 = vcmp.eq.s32.totalorder %v1380_v6, %v1538_v21  ;;  %vm325_vm3 = vcmp.eq.s32.totalorder %v1380_v6, %v1549_v22 }
  0x1b   :  { %1173 = vmatprep.subr.msk.mxu1 %vm188_vm4, %v1308_v9  ;;  %1138 = vmatprep.subr.msk.mxu0 %vm60_vm5, %v1308_v9 }
  0x1c   :  { %1174 = vmatpush3.msk.msra.mxu1 %vm188_vm4, %v1308_v9  ;;  %1139 = vmatpush3.msk.msra.mxu0 %vm60_vm5, %v1308_v9  ;;  %vm452_vm4 = vcmp.eq.s32.totalorder %v1383_v7, %v1538_v21  ;;  %vm324_vm5 = vcmp.eq.s32.totalorder %v1383_v7, %v1549_v22 }
  0x1d   :  { %1175 = vmatprep.subr.msk.mxu1 %vm187_vm6, %v1308_v9  ;;  %1140 = vmatprep.subr.msk.mxu0 %vm59_vm7, %v1308_v9 }
  0x1e   :  { %1176 = vmatpush3.msk.msra.mxu1 %vm187_vm6, %v1308_v9  ;;  %1141 = vmatpush3.msk.msra.mxu0 %vm59_vm7, %v1308_v9  ;;  %vm451_vm6 = vcmp.eq.s32.totalorder %v1386_v8, %v1538_v21  ;;  %vm323_vm7 = vcmp.eq.s32.totalorder %v1386_v8, %v1549_v22 }
  0x1f   :  { %1177 = vmatprep.subr.msk.mxu1 %vm186_vm8, %v1308_v9  ;;  %1142 = vmatprep.subr.msk.mxu0 %vm58_vm9, %v1308_v9 }
  0x20   :  { %1178 = vmatpush3.msk.msra.mxu1 %vm186_vm8, %v1308_v9  ;;  %1143 = vmatpush3.msk.msra.mxu0 %vm58_vm9, %v1308_v9  ;;  %vm450_vm8 = vcmp.eq.s32.totalorder %v1405_v10, %v1538_v21  ;;  %vm322_vm9 = vcmp.eq.s32.totalorder %v1405_v10, %v1549_v22  ;;  %v799_v10 = vsub.s32 0, %v1362_v2 }
  0x21   :  { %1179 = vmatprep.subr.msk.mxu1 %vm185_vm10, %v1308_v9  ;;  %1144 = vmatprep.subr.msk.mxu0 %vm57_vm11, %v1308_v9 }
  0x22   :  { %1180 = vmatpush3.msk.msra.mxu1 %vm185_vm10, %v1308_v9  ;;  %1145 = vmatpush3.msk.msra.mxu0 %vm57_vm11, %v1308_v9  ;;  %vm449_vm10 = vcmp.eq.s32.totalorder %v1416_v11, %v1538_v21  ;;  %vm321_vm11 = vcmp.eq.s32.totalorder %v1416_v11, %v1549_v22 }
  0x23   :  { %1181 = vmatprep.subr.msk.mxu1 %vm184_vm12, %v1308_v9  ;;  %1146 = vmatprep.subr.msk.mxu0 %vm56_vm13, %v1308_v9 }
  0x24   :  { %1182 = vmatpush3.msk.msra.mxu1 %vm184_vm12, %v1308_v9  ;;  %1147 = vmatpush3.msk.msra.mxu0 %vm56_vm13, %v1308_v9  ;;  %vm448_vm12 = vcmp.eq.s32.totalorder %v1427_v12, %v1538_v21  ;;  %vm320_vm13 = vcmp.eq.s32.totalorder %v1427_v12, %v1549_v22 }
  0x25   :  { %1183 = vmatprep.subr.msk.mxu1 %vm183_vm14, %v1308_v9  ;;  %1148 = vmatprep.subr.msk.mxu0 %vm55_vm15, %v1308_v9 }
  0x26   :  { %1184 = vmatpush3.msk.msra.mxu1 %vm183_vm14, %v1308_v9  ;;  %1149 = vmatpush3.msk.msra.mxu0 %vm55_vm15, %v1308_v9  ;;  %vm447_vm14 = vcmp.eq.s32.totalorder %v1438_v13, %v1538_v21  ;;  %vm319_vm15 = vcmp.eq.s32.totalorder %v1438_v13, %v1549_v22 }
  0x27   :  { %1186 = vmatmul.mubr.f32.vlgmr.msra.gmra.mxu1 %v1558_v23  ;;  %1223 = vmatprep.subr.msk.mxu1 %vm454_vm0, %v1308_v9 }
  0x28   :  { %1224 = vmatpush3.msk.msra.mxu1 %vm454_vm0, %v1308_v9  ;;  %1188 = vmatprep.subr.msk.mxu0 %vm326_vm1, %v1308_v9  ;;  %vm446_vm0 = vcmp.eq.s32.totalorder %v1449_v14, %v1538_v21 }
  0x29   :  { %1225 = vmatprep.subr.msk.mxu1 %vm453_vm2, %v1308_v9  ;;  %1151 = vmatmul.mubr.f32.vlgmr.msra.gmra.mxu0 %v1558_v23 }
  0x2a   :  { %1189 = vmatpush3.msk.msra.mxu0 %vm326_vm1, %v1308_v9  ;;  %1226 = vmatpush3.msk.msra.mxu1 %vm453_vm2, %v1308_v9  ;;  %vm318_vm1 = vcmp.eq.s32.totalorder %v1449_v14, %v1549_v22  ;;  %vm445_vm2 = vcmp.eq.s32.totalorder %v1460_v15, %v1538_v21 }
  0x2b   :  { %1190 = vmatprep.subr.msk.mxu0 %vm325_vm3, %v1308_v9  ;;  %1227 = vmatprep.subr.msk.mxu1 %vm452_vm4, %v1308_v9 }
  0x2c   :  { %1191 = vmatpush3.msk.msra.mxu0 %vm325_vm3, %v1308_v9  ;;  %1228 = vmatpush3.msk.msra.mxu1 %vm452_vm4, %v1308_v9  ;;  %vm317_vm3 = vcmp.eq.s32.totalorder %v1460_v15, %v1549_v22  ;;  %vm444_vm4 = vcmp.eq.s32.totalorder %v1471_v16, %v1538_v21 }
  0x2d   :  { %1192 = vmatprep.subr.msk.mxu0 %vm324_vm5, %v1308_v9  ;;  %1229 = vmatprep.subr.msk.mxu1 %vm451_vm6, %v1308_v9 }
  0x2e   :  { %1193 = vmatpush3.msk.msra.mxu0 %vm324_vm5, %v1308_v9  ;;  %1230 = vmatpush3.msk.msra.mxu1 %vm451_vm6, %v1308_v9  ;;  %vm316_vm5 = vcmp.eq.s32.totalorder %v1471_v16, %v1549_v22  ;;  %vm443_vm6 = vcmp.eq.s32.totalorder %v1482_v17, %v1538_v21 }
  0x2f   :  { %1194 = vmatprep.subr.msk.mxu0 %vm323_vm7, %v1308_v9  ;;  %1231 = vmatprep.subr.msk.mxu1 %vm450_vm8, %v1308_v9 }
  0x30   :  { %1195 = vmatpush3.msk.msra.mxu0 %vm323_vm7, %v1308_v9  ;;  %1232 = vmatpush3.msk.msra.mxu1 %vm450_vm8, %v1308_v9  ;;  %vm315_vm7 = vcmp.eq.s32.totalorder %v1482_v17, %v1549_v22  ;;  %vm442_vm8 = vcmp.eq.s32.totalorder %v1493_v18, %v1538_v21 }
  0x31   :  { %1196 = vmatprep.subr.msk.mxu0 %vm322_vm9, %v1308_v9  ;;  %1233 = vmatprep.subr.msk.mxu1 %vm449_vm10, %v1308_v9 }
  0x32   :  { %1197 = vmatpush3.msk.msra.mxu0 %vm322_vm9, %v1308_v9  ;;  %1234 = vmatpush3.msk.msra.mxu1 %vm449_vm10, %v1308_v9  ;;  %vm314_vm9 = vcmp.eq.s32.totalorder %v1493_v18, %v1549_v22  ;;  %vm441_vm10 = vcmp.eq.s32.totalorder %v1504_v19, %v1538_v21 }
  0x33   :  { %1198 = vmatprep.subr.msk.mxu0 %vm321_vm11, %v1308_v9  ;;  %1235 = vmatprep.subr.msk.mxu1 %vm448_vm12, %v1308_v9 }
  0x34   :  { %1199 = vmatpush3.msk.msra.mxu0 %vm321_vm11, %v1308_v9  ;;  %1236 = vmatpush3.msk.msra.mxu1 %vm448_vm12, %v1308_v9  ;;  %vm313_vm11 = vcmp.eq.s32.totalorder %v1504_v19, %v1549_v22  ;;  %vm440_vm12 = vcmp.eq.s32.totalorder %v1515_v20, %v1538_v21 }
  0x35   :  { %1200 = vmatprep.subr.msk.mxu0 %vm320_vm13, %v1308_v9  ;;  %1237 = vmatprep.subr.msk.mxu1 %vm447_vm14, %v1308_v9 }
  0x36   :  { %1201 = vmatpush3.msk.msra.mxu0 %vm320_vm13, %v1308_v9  ;;  %1238 = vmatpush3.msk.msra.mxu1 %vm447_vm14, %v1308_v9  ;;  %vm312_vm13 = vcmp.eq.s32.totalorder %v1515_v20, %v1549_v22  ;;  %vm439_vm14 = vcmp.eq.s32.totalorder %v1362_v2, %v1538_v21 }
  0x37   :  { %1202 = vmatprep.subr.msk.mxu0 %vm319_vm15, %v1308_v9  ;;  %1239 = vmatprep.subr.msk.mxu1 %vm446_vm0, %v1308_v9 }
  0x38   :  { %1203 = vmatpush3.msk.msra.mxu0 %vm319_vm15, %v1308_v9  ;;  %1240 = vmatpush3.msk.msra.mxu1 %vm446_vm0, %v1308_v9  ;;  %vm311_vm15 = vcmp.eq.s32.totalorder %v1362_v2, %v1549_v22  ;;  %vm590_vm0 = vcmask 523264  }
  0x39   :  { %1204 = vmatprep.subr.msk.mxu0 %vm318_vm1, %v1308_v9  ;;  %1241 = vmatprep.subr.msk.mxu1 %vm445_vm2, %v1308_v9 }
  0x3a   :  { %1205 = vmatpush3.msk.msra.mxu0 %vm318_vm1, %v1308_v9  ;;  %1242 = vmatpush3.msk.msra.mxu1 %vm445_vm2, %v1308_v9  ;;  %vm706_vm1 = vcmask 261120   ;;  %vm1311_vm2 = vmmov 0  }
  0x3b   :  { %1206 = vmatprep.subr.msk.mxu0 %vm317_vm3, %v1308_v9  ;;  %1243 = vmatprep.subr.msk.mxu1 %vm444_vm4, %v1308_v9 }
  0x3c   :  { %1207 = vmatpush3.msk.msra.mxu0 %vm317_vm3, %v1308_v9  ;;  %1244 = vmatpush3.msk.msra.mxu1 %vm444_vm4, %v1308_v9  ;;  %vm801_vm3 = vcmask 130048  }
  0x3d   :  { %1208 = vmatprep.subr.msk.mxu0 %vm316_vm5, %v1308_v9  ;;  %1245 = vmatprep.subr.msk.mxu1 %vm443_vm6, %v1308_v9 }
  0x3e   :  { %1209 = vmatpush3.msk.msra.mxu0 %vm316_vm5, %v1308_v9  ;;  %1246 = vmatpush3.msk.msra.mxu1 %vm443_vm6, %v1308_v9 }
  0x3f   :  { %1210 = vmatprep.subr.msk.mxu0 %vm315_vm7, %v1308_v9  ;;  %1247 = vmatprep.subr.msk.mxu1 %vm442_vm8, %v1308_v9 }
  0x40   :  { %1211 = vmatpush3.msk.msra.mxu0 %vm315_vm7, %v1308_v9  ;;  %1248 = vmatpush3.msk.msra.mxu1 %vm442_vm8, %v1308_v9 }
  0x41   :  { %1212 = vmatprep.subr.msk.mxu0 %vm314_vm9, %v1308_v9  ;;  %1249 = vmatprep.subr.msk.mxu1 %vm441_vm10, %v1308_v9 }
  0x42   :  { %1213 = vmatpush3.msk.msra.mxu0 %vm314_vm9, %v1308_v9  ;;  %1250 = vmatpush3.msk.msra.mxu1 %vm441_vm10, %v1308_v9 }
  0x43   :  { %1214 = vmatprep.subr.msk.mxu0 %vm313_vm11, %v1308_v9  ;;  %1251 = vmatprep.subr.msk.mxu1 %vm440_vm12, %v1308_v9 }
  0x44   :  { %1215 = vmatpush3.msk.msra.mxu0 %vm313_vm11, %v1308_v9  ;;  %1252 = vmatpush3.msk.msra.mxu1 %vm440_vm12, %v1308_v9 }
  0x45   :  { %1216 = vmatprep.subr.msk.mxu0 %vm312_vm13, %v1308_v9  ;;  %1253 = vmatprep.subr.msk.mxu1 %vm439_vm14, %v1308_v9 }
  0x46   :  { %1217 = vmatpush3.msk.msra.mxu0 %vm312_vm13, %v1308_v9  ;;  %1254 = vmatpush3.msk.msra.mxu1 %vm439_vm14, %v1308_v9 }
  0x47   :  { %1255 = vmatprep.mubr.f32.mxu1 %v1360_v1  ;;  %1218 = vmatprep.subr.msk.mxu0 %vm311_vm15, %v1308_v9 }
  0x48   :  { %1256 = vmatmul.mubr.f32.vlgmr.msra.gmra.mxu1 %v1558_v23  ;;  %1219 = vmatpush3.msk.msra.mxu0 %vm311_vm15, %v1308_v9  ;;  %v790_v9 = vld [vmem:[%s1757_s6] sm:$0x1] }
  0x49   :  { %1220 = vmatprep.mubr.f32.mxu0 %v1360_v1  ;;  %582 = vperm.xlu0 %1302, %v568_v29  }
  0x4a   :  { %1221 = vmatmul.mubr.f32.vlgmr.msra.gmra.mxu0 %v1558_v23  ;;  %572 = vperm.xlu1 %1303, %v566_v30  }
  0x4b   :  { %1274 = vmatprep.mubr.msk.f32.mxu0 %vm590_vm0, %v562_v24  ;;  %1288 = vmatprep.mubr.msk.f32.mxu1 %vm706_vm1, %v692_v45 }
  0x4d   :  { %703 = vperm.xlu0 %1302, %v695_v31  }
  0x4e   :  { %698 = vperm.xlu1 %1303, %v694_v32  }
  0x51   :  { %794 = vperm.xlu0 %1302, %v791_v33  }
  0x7e   :  { %v588_v46 = vpop.permute.xlu0 %587  ;;  %v578_v47 = vpop.permute.xlu1 %577 }
  0xc4   :  { %v583_v51 = vpop.permute.xlu0 %582 }
  0xc5   :  { %v573_v53 = vpop.permute.xlu1 %572 }
  0xc8   :  { %v704_v0 = vpop.permute.xlu0 %703 }
  0xc9   :  { %v699_v4 = vpop.permute.xlu1 %698 }
  0xcc   :  { %v795_v11 = vpop.permute.xlu0 %794 }
  0xcd   :  { %v800_v12 = vrot.slane %v795_v11, %v799_v10 }
  0xe7   :  { %v1187_v34 = vpop.f32.mrf.mxu1 }
  0xe9   :  { %v1152_v35 = vpop.f32.mrf.mxu0  ;;  %v297_v36 = vpop.f32.mrf.mxu1 }
  0xeb   :  { %v169_v37 = vpop.f32.mrf.mxu0 }
 0x108   :  { %v1257_v38 = vpop.f32.mrf.mxu1 }
 0x109   :  { %1258 = vmatprep.subr.mxu0 %v1257_v38 }
 0x10a   :  { %v1222_v39 = vpop.f32.mrf.mxu0  ;;  %v553_v40 = vpop.f32.mrf.mxu1  ;;  %1259 = vmatpush3.msra.mxu0 %v1257_v38 }
 0x10b   :  { %1260 = vmatprep.subr.mxu0 %v553_v40 }
 0x10c   :  { %1261 = vmatpush3.msra.mxu0 %v553_v40  ;;  %v425_v41 = vpop.f32.mrf.mxu0 }
 0x10d   :  { %1262 = vmatprep.subr.mxu0 %v1222_v39 }
 0x10e   :  { %1263 = vmatpush3.msra.mxu0 %v1222_v39 }
 0x10f   :  { %1264 = vmatprep.subr.mxu0 %v425_v41 }
 0x110   :  { %1265 = vmatpush3.msra.mxu0 %v425_v41 }
 0x111   :  { %1266 = vmatprep.subr.mxu0 %v1187_v34 }
 0x112   :  { %1267 = vmatpush3.msra.mxu0 %v1187_v34 }
 0x113   :  { %1268 = vmatprep.subr.mxu0 %v297_v36 }
 0x114   :  { %1269 = vmatpush3.msra.mxu0 %v297_v36 }
 0x115   :  { %1270 = vmatprep.subr.mxu0 %v1152_v35 }
 0x116   :  { %1271 = vmatpush3.msra.mxu0 %v1152_v35 }
 0x117   :  { %1272 = vmatprep.subr.mxu0 %v169_v37 }
 0x118   :  { %1273 = vmatpush3.msra.mxu0 %v169_v37 }
 0x119   :  { %1275 = vmatmul.mubr.msk.f32.vlgmr.msra.gmra.mxu0 %vm590_vm0, %v563_v42 }
 0x11a   :  { %1277 = vmatprep.mubr.msk.f32.mxu0 %vm590_vm0, %v564_v43 }
 0x11d   :  { %1278 = vmatmul.mubr.msk.f32.gmra.mxu0 %vm590_vm0, %v565_v44 }
 0x1d9   :  { %v1276_v48 = vpop.f32.mrf.mxu0 }
 0x1da   :  { %v675_v55 = vadd.f32 %v1276_v48, %v578_v47 }
 0x1db   :  { %v669_v49 = vpop.f32.mrf.mxu0 }
 0x1dc   :  { %v670_v58 = vadd.f32 %v669_v49, %v573_v53  ;;  %v689_v60 = vmax.f32 %v675_v55, 0.0 }
 0x1dd   :  { %v1279_v50 = vpop.f32.mrf.mxu0 }
 0x1de   :  { %v685_v52 = vadd.f32 %v1279_v50, %v588_v46  ;;  %v688_v61 = vmax.f32 %v670_v58, 0.0 }
 0x1df   :  { %v679_v54 = vpop.f32.mrf.mxu0 }
 0x1e0   :  { %v691_v56 = vmax.f32 %v685_v52, 0.0  ;;  %v680_v57 = vadd.f32 %v679_v54, %v583_v51 }
 0x1e2   :  { %v690_v59 = vmax.f32 %v680_v57, 0.0  ;;  %1280 = vmatprep.subr.mxu1 %v691_v56 }
 0x1e3   :  { %1281 = vmatpush3.msra.mxu1 %v691_v56 }
 0x1e4   :  { %1282 = vmatprep.subr.mxu1 %v690_v59 }
 0x1e5   :  { %1283 = vmatpush3.msra.mxu1 %v690_v59 }
 0x1e6   :  { %1284 = vmatprep.subr.mxu1 %v689_v60 }
 0x1e7   :  { %1285 = vmatpush3.msra.mxu1 %v689_v60 }
 0x1e8   :  { %1286 = vmatprep.subr.mxu1 %v688_v61 }
 0x1e9   :  { %1287 = vmatpush3.msra.mxu1 %v688_v61 }
 0x1ea   :  { %1289 = vmatmul.mubr.msk.f32.vlgmr.msra.gmra.mxu1 %vm706_vm1, %v693_v62  ;;  %1291 = vmatprep.subr.mxu1 %v1310_v63 }
 0x1eb   :  { %1295 = vmatprep.mubr.msk.f32.mxu1 %vm1311_vm2, %v1310_v63 }
 0x2aa   :  { %v1290_v1 = vpop.f32.mrf.mxu1 }
 0x2ab   :  { %v785_v3 = vadd.f32 %v1290_v1, %v704_v0 }
 0x2ac   :  { %v779_v5 = vpop.f32.mrf.mxu1 }
 0x2ad   :  { %v789_v6 = vmax.f32 %v785_v3, 0.0  ;;  %v780_v7 = vadd.f32 %v779_v5, %v699_v4 }
 0x2af   :  { %v788_v8 = vmax.f32 %v780_v7, 0.0  ;;  %1292 = vmatpush3.msra.mxu1 %v789_v6 }
 0x2b0   :  { %1293 = vmatprep.subr.mxu1 %v1310_v63 }
 0x2b1   :  { %1294 = vmatpush3.msra.mxu1 %v788_v8 }
 0x2b2   :  { %1296 = vmatmul.mubr.msk.f32.vlgmr.msra.gmra.mxu1 %vm801_vm3, %v790_v9 }
 0x372   :  { %v871_v13 = vpop.f32.mrf.mxu1 }
 0x373   :  { %v872_v14 = vadd.f32 %v871_v13, %v800_v12 }
 0x374   :  { %v1297_v15 = vpop.f32.mrf.mxu1 }
 0x375   :  { %v875_v16 = vsub.f32 0.0, %v872_v14 }
 0x377   :  { %v876_v17 = vmul.f32 1.442695, %v875_v16 }
 0x379   :  { %1304 = vpow2.f32 %v876_v17 }
 0x386   :  { %v1305_v18 = vpop.eup %1304 }
 0x387   :  { %v878_v19 = vadd.f32 1.0, %v1305_v18 }
 0x389   :  { %1306 = vrcp.f32 %v878_v19 }
 0x396   :  { %v1307_v20 = vpop.eup %1306 }
 0x397   :  { %881 = vst [vmem:[%s1758_s8] sm:$0x1] %v1307_v20 }

</bundles_post_ra>
